<compile_context>
chip_gen: v6e
topology: v6e:2x2x1
jax: 0.10.0
libtpu: 0.0.40
codegen_flags: <defaults>
</compile_context>

<pallas_src>
import jax
import jax.numpy as jnp
from jax.experimental import pallas as pl
from jax.experimental.pallas import tpu as pltpu

HID = 32
IN_DIM = 4
IN_PAD = 8            # input rows padded to a full sublane group
N_LAYERS = 4          # hidden Linear+BN+ReLU blocks
BN_EPS = 1e-5
TILE_N = 16384        # batch tile on the lane axis, per grid step
CHUNK_N = 512         # in-kernel lane chunk (activations stay in vregs)


def _round_up(n, m):
    return ((n + m - 1) // m) * m


def _make_kernel(chunk, n_chunks):
    def kernel(x_ref, w1_ref, wh_ref, b_ref, w5_ref, b5_ref, o_ref):
        w1 = w1_ref[...]          # (HID, IN_PAD) bf16, layer-1 folded weight
        w5 = w5_ref[...]          # (1, HID) f32, final Linear
        b5 = b5_ref[...]          # (1, 1)  f32

        def chunk_body(col):
            xc = x_ref[:, pl.ds(col, chunk)]                        # (IN_PAD, chunk) f32
            # Layer 1: bf16 matmul, f32 accumulation, f32 bias.
            h = jnp.dot(w1, xc.astype(jnp.bfloat16),
                        preferred_element_type=jnp.float32) + b_ref[0]
            h = jnp.maximum(h, 0.0)                                 # ReLU (Dropout = id in eval)
            # Layers 2-4: folded Linear(32,32)+BN, ReLU — all lane-dense vreg work.
            for l in range(N_LAYERS - 1):
                h = jnp.dot(wh_ref[l], h.astype(jnp.bfloat16),
                            preferred_element_type=jnp.float32) + b_ref[l + 1]
                h = jnp.maximum(h, 0.0)
            # Final Linear(32,1) + Sigmoid (kept f32; M=1 so it's tiny).
            logit = jnp.dot(w5, h, preferred_element_type=jnp.float32) + b5
            sig = jax.nn.sigmoid(logit)                             # EUP path
            # const_func(x) - model(x) = -0.1 * x[:, 0] - sigmoid(...)
            o_ref[:, pl.ds(col, chunk)] = -0.1 * xc[0:1, :] - sig

        if n_chunks <= 8:
            # Short static trip count: fully unrolled with static offsets.
            for c in range(n_chunks):
                chunk_body(c * chunk)
        else:
            @pl.loop(0, n_chunks)
            def _(c):
                chunk_body(pl.multiple_of(c * chunk, chunk))

    return kernel


def safe_value_forward(x, folded_params, tile_n=TILE_N):
    """x: (N, IN_DIM) float32 -> (N, 1) float32 (eval-mode SafeValue.forward)."""
    w1, wh, b_stack, w5, b5 = folded_params
    n = x.shape[0]

    # Lane tile: always a multiple of 128 (and of the in-kernel chunk).
    n128 = max(128, _round_up(n, 128))
    tile = max(128, min(_round_up(tile_n, 128), n128))
    # v7x has 2 TensorCores: prefer >= 2 "parallel" grid steps when there is
    # enough data (harmless on v5e/v6e — the tiles just pipeline).
    if tile >= n128 and n128 >= 256:
        tile = _round_up(n128 // 2, 128)
    chunk = min(CHUNK_N, tile)
    tile = _round_up(tile, chunk)
    n_pad = _round_up(n, tile)
    n_chunks = tile // chunk

    # Batch on the lane axis; rows padded 4 -> 8 so layer 1 is a full (32,8)@(8,T).
    xt = jnp.pad(x.astype(jnp.float32).T,
                 ((0, IN_PAD - IN_DIM), (0, n_pad - n)))

    out = pl.pallas_call(
        _make_kernel(chunk, n_chunks),
        out_shape=jax.ShapeDtypeStruct((1, n_pad), jnp.float32),
        grid=(n_pad // tile,),
        in_specs=[
            # Batch-tiled, pipelined input stream.
            pl.BlockSpec((IN_PAD, tile), lambda i: (0, i)),
            # Parameters: constant index_map -> fetched once, VMEM-resident.
            pl.BlockSpec((HID, IN_PAD), lambda i: (0, 0)),
            pl.BlockSpec((N_LAYERS - 1, HID, HID), lambda i: (0, 0, 0)),
            pl.BlockSpec((N_LAYERS, HID, 1), lambda i: (0, 0, 0)),
            pl.BlockSpec((1, HID), lambda i: (0, 0)),
            pl.BlockSpec((1, 1), lambda i: (0, 0)),
        ],
        out_specs=pl.BlockSpec((1, tile), lambda i: (0, i)),
        compiler_params=pltpu.CompilerParams(
            dimension_semantics=("parallel",),   # shard batch tiles across TCs (v7x)
            vmem_limit_bytes=32 << 20,
        ),
    )(xt, w1, wh, b_stack, w5, b5)

    return out[0, :n].reshape(n, 1)


def make_raw_params(key):
    """Deterministic synthetic params matching the nn.Module (PyTorch layout)."""
    keys = jax.random.split(key, 32)
    k = iter(keys)

    def linear(in_dim, out_dim):
        w = jax.random.normal(next(k), (out_dim, in_dim), jnp.float32) * 0.3
        b = jax.random.normal(next(k), (out_dim,), jnp.float32) * 0.1
        return w, b

    def bn(dim):
        gamma = 1.0 + 0.1 * jax.random.normal(next(k), (dim,), jnp.float32)
        beta = 0.1 * jax.random.normal(next(k), (dim,), jnp.float32)
        mean = 0.05 * jax.random.normal(next(k), (dim,), jnp.float32)
        var = 1.0 + 0.1 * jax.random.uniform(next(k), (dim,), jnp.float32)
        return gamma, beta, mean, var

    layers = []
    d_in = IN_DIM
    for _ in range(N_LAYERS):
        w, b = linear(d_in, HID)
        layers.append((w, b) + bn(HID))
        d_in = HID
    w5, b5 = linear(HID, 1)
    return layers, (w5, b5)


def fold_params(raw):
    """Fold eval-mode BatchNorm into the Linears and pack into kernel slabs."""
    layers, (w5, b5) = raw
    w1 = jnp.zeros((HID, IN_PAD), jnp.float32)
    wh = jnp.zeros((N_LAYERS - 1, HID, HID), jnp.float32)
    b_stack = jnp.zeros((N_LAYERS, HID, 1), jnp.float32)
    for l, (w, b, gamma, beta, mean, var) in enumerate(layers):
        scale = gamma / jnp.sqrt(var + BN_EPS)                 # (HID,)
        shift = beta - mean * scale
        wf = w * scale[:, None]                                # (HID, in_dim)
        bf = b * scale + shift                                 # (HID,)
        if l == 0:
            w1 = w1.at[:, :IN_DIM].set(wf)
        else:
            wh = wh.at[l - 1].set(wf)
        b_stack = b_stack.at[l, :, 0].set(bf)
    return (w1.astype(jnp.bfloat16),                           # MXU-native hidden weights
            wh.astype(jnp.bfloat16),
            b_stack,                                           # f32 biases (exact adds)
            w5.reshape(1, HID).astype(jnp.float32),            # final Linear kept f32
            b5.reshape(1, 1).astype(jnp.float32))


def safe_value_ref(x, raw):
    """Pure-JAX eval-mode reference (unfolded BN, f32) for validation."""
    layers, (w5, b5) = raw
    h = x
    for (w, b, gamma, beta, mean, var) in layers:
        y = h @ w.T + b
        y = (y - mean) / jnp.sqrt(var + BN_EPS) * gamma + beta
        h = jnp.maximum(y, 0.0)
    sig = jax.nn.sigmoid(h @ w5.T + b5)
    return -0.1 * x[:, 0:1] - sig


if __name__ == "__main__":
    key = jax.random.PRNGKey(0)
    k_x, k_p = jax.random.split(key)

    batch = 8
    x = jax.random.normal(k_x, (batch, IN_DIM), jnp.float32)
    raw = make_raw_params(k_p)
    folded = fold_params(raw)

    out = safe_value_forward(x, folded)
    out = jax.block_until_ready(out)
    assert out.shape == (batch, 1), out.shape

    ref = safe_value_ref(x, raw)
    # bf16 hidden matmuls (f32 accumulation / biases): tolerance relaxed vs 1e-5.
    assert jnp.allclose(out, ref, atol=2e-2, rtol=0.0), (out, ref)

    print("KERNEL_OK")
</pallas_src>

<mosaic_0001>
module attributes {stable_mosaic.version = 11 : i64} {
  func.func @kernel(%arg0: i32, %arg1: memref<8x128xf32, #tpu.memory_space<vmem>>, %arg2: memref<32x8xbf16, #tpu.memory_space<vmem>>, %arg3: memref<3x32x32xbf16, #tpu.memory_space<vmem>>, %arg4: memref<4x32x1xf32, #tpu.memory_space<vmem>>, %arg5: memref<1x32xf32, #tpu.memory_space<vmem>>, %arg6: memref<1x1xf32, #tpu.memory_space<vmem>>, %arg7: memref<1x128xf32, #tpu.memory_space<vmem>>) attributes {dimension_semantics = [#tpu.dimension_semantics<parallel>], iteration_bounds = array<i64: 1>, scalar_prefetch = 0 : i64, scratch_operands = 0 : i64, tpu.core_type = #tpu.core_type<tc>, window_params = [{transform_indices = @transform_0, window_bounds = array<i64: 8, 128>}, {pipeline_mode = #tpu.pipeline_mode<synchronous>, transform_indices = @transform_1, window_bounds = array<i64: 32, 8>}, {pipeline_mode = #tpu.pipeline_mode<synchronous>, transform_indices = @transform_2, window_bounds = array<i64: 3, 32, 32>}, {pipeline_mode = #tpu.pipeline_mode<synchronous>, transform_indices = @transform_3, window_bounds = array<i64: 4, 32, 1>}, {pipeline_mode = #tpu.pipeline_mode<synchronous>, transform_indices = @transform_4, window_bounds = array<i64: 1, 32>}, {pipeline_mode = #tpu.pipeline_mode<synchronous>, transform_indices = @transform_5, window_bounds = array<i64: 1, 1>}, {transform_indices = @transform_6, window_bounds = array<i64: 1, 128>}]} {
    %c0 = arith.constant 0 : index
    %c0_0 = arith.constant 0 : index
    %0 = vector.load %arg2[%c0, %c0_0] : memref<32x8xbf16, #tpu.memory_space<vmem>>, vector<32x8xbf16>
    %c0_1 = arith.constant 0 : index
    %c0_2 = arith.constant 0 : index
    %1 = vector.load %arg5[%c0_1, %c0_2] : memref<1x32xf32, #tpu.memory_space<vmem>>, vector<1x32xf32>
    %c0_3 = arith.constant 0 : index
    %c0_4 = arith.constant 0 : index
    %2 = vector.load %arg6[%c0_3, %c0_4] : memref<1x1xf32, #tpu.memory_space<vmem>>, vector<1x1xf32>
    %c0_5 = arith.constant 0 : index
    %c0_6 = arith.constant 0 : index
    %3 = vector.load %arg1[%c0_5, %c0_6] : memref<8x128xf32, #tpu.memory_space<vmem>>, vector<8x128xf32>
    %4 = arith.truncf %3 : vector<8x128xf32> to vector<8x128xbf16>
    %cst = arith.constant dense<0.000000e+00> : vector<32x128xf32>
    %5 = tpu.matmul %0, %4, %cst {dimension_numbers = #tpu.dot_dimension_numbers<[1], [0], [0], [1], [0, 0, 1, 1], [], []>} : vector<32x8xbf16>, vector<8x128xbf16>, vector<32x128xf32> -> vector<32x128xf32>
    %c0_7 = arith.constant 0 : index
    %c0_8 = arith.constant 0 : index
    %c0_9 = arith.constant 0 : index
    %6 = vector.load %arg4[%c0_7, %c0_8, %c0_9] : memref<4x32x1xf32, #tpu.memory_space<vmem>>, vector<1x32x1xf32>
    %7 = vector.shape_cast %6 : vector<1x32x1xf32> to vector<32x1xf32>
    %8 = vector.broadcast %7 : vector<32x1xf32> to vector<32x128xf32>
    %9 = arith.addf %5, %8 : vector<32x128xf32>
    %cst_10 = arith.constant 0.000000e+00 : f32
    %10 = vector.broadcast %cst_10 : f32 to vector<32x128xf32>
    %11 = arith.maximumf %9, %10 : vector<32x128xf32>
    %c0_11 = arith.constant 0 : index
    %c0_12 = arith.constant 0 : index
    %c0_13 = arith.constant 0 : index
    %12 = vector.load %arg3[%c0_11, %c0_12, %c0_13] : memref<3x32x32xbf16, #tpu.memory_space<vmem>>, vector<1x32x32xbf16>
    %13 = vector.shape_cast %12 : vector<1x32x32xbf16> to vector<32x32xbf16>
    %14 = arith.truncf %11 : vector<32x128xf32> to vector<32x128xbf16>
    %cst_14 = arith.constant dense<0.000000e+00> : vector<32x128xf32>
    %15 = tpu.matmul %13, %14, %cst_14 {dimension_numbers = #tpu.dot_dimension_numbers<[1], [0], [0], [1], [0, 0, 1, 1], [], []>} : vector<32x32xbf16>, vector<32x128xbf16>, vector<32x128xf32> -> vector<32x128xf32>
    %c1 = arith.constant 1 : index
    %c0_15 = arith.constant 0 : index
    %c0_16 = arith.constant 0 : index
    %16 = vector.load %arg4[%c1, %c0_15, %c0_16] : memref<4x32x1xf32, #tpu.memory_space<vmem>>, vector<1x32x1xf32>
    %17 = vector.shape_cast %16 : vector<1x32x1xf32> to vector<32x1xf32>
    %18 = vector.broadcast %17 : vector<32x1xf32> to vector<32x128xf32>
    %19 = arith.addf %15, %18 : vector<32x128xf32>
    %cst_17 = arith.constant 0.000000e+00 : f32
    %20 = vector.broadcast %cst_17 : f32 to vector<32x128xf32>
    %21 = arith.maximumf %19, %20 : vector<32x128xf32>
    %c1_18 = arith.constant 1 : index
    %c0_19 = arith.constant 0 : index
    %c0_20 = arith.constant 0 : index
    %22 = vector.load %arg3[%c1_18, %c0_19, %c0_20] : memref<3x32x32xbf16, #tpu.memory_space<vmem>>, vector<1x32x32xbf16>
    %23 = vector.shape_cast %22 : vector<1x32x32xbf16> to vector<32x32xbf16>
    %24 = arith.truncf %21 : vector<32x128xf32> to vector<32x128xbf16>
    %cst_21 = arith.constant dense<0.000000e+00> : vector<32x128xf32>
    %25 = tpu.matmul %23, %24, %cst_21 {dimension_numbers = #tpu.dot_dimension_numbers<[1], [0], [0], [1], [0, 0, 1, 1], [], []>} : vector<32x32xbf16>, vector<32x128xbf16>, vector<32x128xf32> -> vector<32x128xf32>
    %c2 = arith.constant 2 : index
    %c0_22 = arith.constant 0 : index
    %c0_23 = arith.constant 0 : index
    %26 = vector.load %arg4[%c2, %c0_22, %c0_23] : memref<4x32x1xf32, #tpu.memory_space<vmem>>, vector<1x32x1xf32>
    %27 = vector.shape_cast %26 : vector<1x32x1xf32> to vector<32x1xf32>
    %28 = vector.broadcast %27 : vector<32x1xf32> to vector<32x128xf32>
    %29 = arith.addf %25, %28 : vector<32x128xf32>
    %cst_24 = arith.constant 0.000000e+00 : f32
    %30 = vector.broadcast %cst_24 : f32 to vector<32x128xf32>
    %31 = arith.maximumf %29, %30 : vector<32x128xf32>
    %c2_25 = arith.constant 2 : index
    %c0_26 = arith.constant 0 : index
    %c0_27 = arith.constant 0 : index
    %32 = vector.load %arg3[%c2_25, %c0_26, %c0_27] : memref<3x32x32xbf16, #tpu.memory_space<vmem>>, vector<1x32x32xbf16>
    %33 = vector.shape_cast %32 : vector<1x32x32xbf16> to vector<32x32xbf16>
    %34 = arith.truncf %31 : vector<32x128xf32> to vector<32x128xbf16>
    %cst_28 = arith.constant dense<0.000000e+00> : vector<32x128xf32>
    %35 = tpu.matmul %33, %34, %cst_28 {dimension_numbers = #tpu.dot_dimension_numbers<[1], [0], [0], [1], [0, 0, 1, 1], [], []>} : vector<32x32xbf16>, vector<32x128xbf16>, vector<32x128xf32> -> vector<32x128xf32>
    %c3 = arith.constant 3 : index
    %c0_29 = arith.constant 0 : index
    %c0_30 = arith.constant 0 : index
    %36 = vector.load %arg4[%c3, %c0_29, %c0_30] : memref<4x32x1xf32, #tpu.memory_space<vmem>>, vector<1x32x1xf32>
    %37 = vector.shape_cast %36 : vector<1x32x1xf32> to vector<32x1xf32>
    %38 = vector.broadcast %37 : vector<32x1xf32> to vector<32x128xf32>
    %39 = arith.addf %35, %38 : vector<32x128xf32>
    %cst_31 = arith.constant 0.000000e+00 : f32
    %40 = vector.broadcast %cst_31 : f32 to vector<32x128xf32>
    %41 = arith.maximumf %39, %40 : vector<32x128xf32>
    %cst_32 = arith.constant dense<0.000000e+00> : vector<1x128xf32>
    %42 = tpu.matmul %1, %41, %cst_32 {dimension_numbers = #tpu.dot_dimension_numbers<[1], [0], [0], [1], [0, 0, 1, 1], [], []>} : vector<1x32xf32>, vector<32x128xf32>, vector<1x128xf32> -> vector<1x128xf32>
    %43 = vector.broadcast %2 : vector<1x1xf32> to vector<1x128xf32>
    %44 = arith.addf %42, %43 : vector<1x128xf32>
    %45 = arith.negf %44 : vector<1x128xf32>
    %46 = math.exp %45 : vector<1x128xf32>
    %cst_33 = arith.constant 1.000000e+00 : f32
    %47 = vector.broadcast %cst_33 : f32 to vector<1x128xf32>
    %48 = arith.addf %47, %46 : vector<1x128xf32>
    %49 = arith.divf %47, %48 : vector<1x128xf32>
    %50 = vector.extract_strided_slice %3 {offsets = [0, 0], sizes = [1, 128], strides = [1, 1]} : vector<8x128xf32> to vector<1x128xf32>
    %cst_34 = arith.constant -1.000000e-01 : f32
    %51 = vector.broadcast %cst_34 : f32 to vector<1x128xf32>
    %52 = arith.mulf %51, %50 : vector<1x128xf32>
    %53 = arith.subf %52, %49 : vector<1x128xf32>
    %c0_35 = arith.constant 0 : index
    %c0_36 = arith.constant 0 : index
    %54 = vector.load %arg7[%c0_35, %c0_36] : memref<1x128xf32, #tpu.memory_space<vmem>>, vector<1x128xf32>
    tpu.vector_store %arg7[%c0_35, %c0_36], %53 {strides = array<i32>} : memref<1x128xf32, #tpu.memory_space<vmem>>, vector<1x128xf32>,
    return
  }
  func.func @transform_0(%arg0: i32) -> (i32, i32) {
    %c0_i32 = arith.constant 0 : i32
    %c0_i32_0 = arith.constant 0 : i32
    return %c0_i32, %arg0 : i32, i32
  }
  func.func @transform_1(%arg0: i32) -> (i32, i32) {
    %c0_i32 = arith.constant 0 : i32
    %c0_i32_0 = arith.constant 0 : i32
    %c0_i32_1 = arith.constant 0 : i32
    return %c0_i32, %c0_i32_0 : i32, i32
  }
  func.func @transform_2(%arg0: i32) -> (i32, i32, i32) {
    %c0_i32 = arith.constant 0 : i32
    %c0_i32_0 = arith.constant 0 : i32
    %c0_i32_1 = arith.constant 0 : i32
    %c0_i32_2 = arith.constant 0 : i32
    return %c0_i32, %c0_i32_0, %c0_i32_1 : i32, i32, i32
  }
  func.func @transform_3(%arg0: i32) -> (i32, i32, i32) {
    %c0_i32 = arith.constant 0 : i32
    %c0_i32_0 = arith.constant 0 : i32
    %c0_i32_1 = arith.constant 0 : i32
    %c0_i32_2 = arith.constant 0 : i32
    return %c0_i32, %c0_i32_0, %c0_i32_1 : i32, i32, i32
  }
  func.func @transform_4(%arg0: i32) -> (i32, i32) {
    %c0_i32 = arith.constant 0 : i32
    %c0_i32_0 = arith.constant 0 : i32
    %c0_i32_1 = arith.constant 0 : i32
    return %c0_i32, %c0_i32_0 : i32, i32
  }
  func.func @transform_5(%arg0: i32) -> (i32, i32) {
    %c0_i32 = arith.constant 0 : i32
    %c0_i32_0 = arith.constant 0 : i32
    %c0_i32_1 = arith.constant 0 : i32
    return %c0_i32, %c0_i32_0 : i32, i32
  }
  func.func @transform_6(%arg0: i32) -> (i32, i32) {
    %c0_i32 = arith.constant 0 : i32
    %c0_i32_0 = arith.constant 0 : i32
    return %c0_i32, %arg0 : i32, i32
  }
}

</mosaic_0001>

<bundles_post_ra>
// kernel: tpu_custom_call.1
= control target key start
LH: loop header
LB: loop body
LE: loop exit
PB: predicated region body
PF: predicated region fallthrough
CT: control target
= control target key end

     0   :  { %s816_s0 = inlined_call_operand.vmem [shape: f32[8,128], index: 0, kind: input, shape index: {}]   ;;  %s817_s1 = inlined_call_operand.vmem [shape: bf16[32,8], index: 1, kind: input, shape index: {}]   ;;  %s818_s2 = inlined_call_operand.vmem [shape: bf16[3,32,32], index: 2, kind: input, shape index: {}]   ;;  %s819_s3 = inlined_call_operand.vmem [shape: f32[4,32,1], index: 3, kind: input, shape index: {}]   ;;  %s820_s4 = inlined_call_operand.vmem [shape: f32[1,32], index: 4, kind: input, shape index: {}]   ;;  %s821_s5 = inlined_call_operand.<no memory space> [shape: f32[1,1], index: 5, kind: input, shape index: {}]   ;;  %s822_s6 = inlined_call_operand.hbm [shape: f32[1,128], index: 6, kind: output, shape index: {}]  }
   0x1   :  { %v11_v0 = vstv %s821_s5 }
   0x2   :  { %12 = vst [vmem:[#allocation2] sm:$0x1] %v11_v0 }
   0x3   :  { %v726_v1 = vld [vmem:[%s816_s0] sm:$0xff]  ;;  %vm76_vm0 = vcmask 1043456   ;;  %vm69_vm1 = vcmask 64512   ;;  %v37_v4 = vld [vmem:[%s819_s3 + $0x10] sm:$0xff]  ;;  %v648_v6 = vld [vmem:[%s817_s1 + $0x8] sm:$0xff]   ;;  %v681_v8 = vmov 0  }
   0x4   :  { %v34_v2 = vpack.c.bf16 %v726_v1, %v726_v1  ;;  %v647_v3 = vld [vmem:[%s817_s1] sm:$0xff]   ;;  %645 = vset.pattern.permute.xlu0 %v681_v8  ;;  %646 = vset.pattern.permute.xlu1 %v681_v8  ;;  %v38_v9 = vld [vmem:[%s819_s3 + $0x18] sm:$0xff]  ;;  %v36_v10 = vld [vmem:[%s819_s3 + $0x8] sm:$0xff] }
   0x5   :  { %601 = vmatprep.mubr.msk.bf16.mxu0 %vm69_vm1, %v647_v3  ;;  %v35_v7 = vld [vmem:[%s819_s3] sm:$0xff]  ;;  %51 = vperm.xlu0 %645, %v37_v4   ;;  %v547_v11 = vld [vmem:[%s819_s3 + $0x30] sm:$0xff]  ;;  %v548_v12 = vld [vmem:[%s819_s3 + $0x38] sm:$0xff] }
   0x6   :  { %640 = vmatprep.subr.msk.bf16.mxu0 %vm76_vm0, %v34_v2  ;;  %v78_v5 = vsel %vm76_vm0, %v34_v2, 0  ;;  %41 = vperm.xlu1 %646, %v35_v7  }
   0x7   :  { %600 = vmatpush3.bf16.msra.mxu0 %v78_v5 }
   0x9   :  { %56 = vperm.xlu0 %645, %v38_v9  }
   0xa   :  { %602 = vmatmul.mubr.msk.bf16.vlgmr.msra.gmra.mxu0 %vm69_vm1, %v648_v6  ;;  %46 = vperm.xlu1 %646, %v36_v10  }
   0xb   :  { %13 = vsyncpa [#allocation4], 0  ;;  %v545_v13 = vld [vmem:[%s819_s3 + $0x20] sm:$0xff]  ;;  %v546_v14 = vld [vmem:[%s819_s3 + $0x28] sm:$0xff]  ;;  %vm174_vm2 = vcmask 261120   ;;  %vm683_vm3 = vmmov 0  }
   0xc   :  { %v559_v15 = vld [vmem:[%s819_s3 + $0x50] sm:$0xff]  ;;  %v560_v16 = vld [vmem:[%s819_s3 + $0x58] sm:$0xff]  ;;  %v557_v17 = vld [vmem:[%s819_s3 + $0x40] sm:$0xff] }
   0xd   :  { %156 = vperm.xlu0 %645, %v547_v11   ;;  %v558_v18 = vld [vmem:[%s819_s3 + $0x48] sm:$0xff]  ;;  %v572_v19 = vld [vmem:[%s819_s3 + $0x78] sm:$0xff]  ;;  %v571_v20 = vld [vmem:[%s819_s3 + $0x70] sm:$0xff] }
   0xe   :  { %161 = vperm.xlu1 %646, %v548_v12   ;;  %v570_v21 = vld [vmem:[%s819_s3 + $0x68] sm:$0xff]  ;;  %v569_v22 = vld [vmem:[%s819_s3 + $0x60] sm:$0xff]  ;;  %v651_v44 = vld [vmem:[%s818_s2 + $0x10] sm:$0xff]  }
   0xf   :  { %v32_v23 = vld [vmem:[#allocation2] sm:$0x1]  ;;  %v650_v43 = vld [vmem:[%s818_s2 + $0x8] sm:$0xff]   ;;  %617 = vmatprep.mubr.msk.bf16.mxu0 %vm174_vm2, %v651_v44  ;;  %v652_v63 = vld [vmem:[%s818_s2 + $0x18] sm:$0xff]  }
  0x10   :  { %v649_v24 = vld [vmem:[%s818_s2] sm:$0xff]  }
  0x11   :  { %146 = vperm.xlu0 %645, %v545_v13   ;;  %609 = vmatprep.mubr.msk.bf16.mxu1 %vm174_vm2, %v649_v24  ;;  %v653_v0 = vld [vmem:[%s818_s2 + $0x20] sm:$0xff]  }
  0x12   :  { %151 = vperm.xlu1 %646, %v546_v14  }
  0x15   :  { %258 = vperm.xlu0 %645, %v559_v15  }
  0x16   :  { %263 = vperm.xlu1 %646, %v560_v16  }
  0x19   :  { %248 = vperm.xlu0 %645, %v557_v17  }
  0x1a   :  { %253 = vperm.xlu1 %646, %v558_v18  }
  0x1d   :  { %364 = vperm.xlu0 %645, %v572_v19  }
  0x1e   :  { %359 = vperm.xlu1 %646, %v571_v20   ;;  %v654_v20 = vld [vmem:[%s818_s2 + $0x28] sm:$0xff]  }
  0x21   :  { %354 = vperm.xlu0 %645, %v570_v21   ;;  %v682_v21 = vmov 0.0  }
  0x22   :  { %349 = vperm.xlu1 %646, %v569_v22  }
  0x25   :  { %438 = vperm.xlu0 %645, %v32_v23  }
  0x80   :  { %v52_v25 = vpop.permute.xlu0 %51 }
  0x81   :  { %v42_v26 = vpop.permute.xlu1 %41 }
  0x84   :  { %v57_v30 = vpop.permute.xlu0 %56 }
  0x85   :  { %v47_v34 = vpop.permute.xlu1 %46 }
  0x88   :  { %v157_v45 = vpop.permute.xlu0 %156 }
  0x89   :  { %v162_v46 = vpop.permute.xlu1 %161 }
  0x8c   :  { %v147_v50 = vpop.permute.xlu0 %146 }
  0x8d   :  { %v152_v54 = vpop.permute.xlu1 %151 }
  0x90   :  { %v259_v2 = vpop.permute.xlu0 %258 }
  0x91   :  { %v264_v3 = vpop.permute.xlu1 %263 }
  0x94   :  { %v249_v7 = vpop.permute.xlu0 %248 }
  0x95   :  { %v254_v11 = vpop.permute.xlu1 %253 }
  0x98   :  { %v365_v22 = vpop.permute.xlu0 %364 }
  0x99   :  { %v360_v24 = vpop.permute.xlu1 %359 }
  0xca   :  { %v603_v27 = vpop.f32.mrf.mxu0 }
  0xcb   :  { %v123_v29 = vadd.f32 %v603_v27, %v52_v25 }
  0xcc   :  { %v114_v28 = vpop.f32.mrf.mxu0 }
  0xcd   :  { %v115_v32 = vadd.f32 %v114_v28, %v42_v26  ;;  %v131_v36 = vmax.f32 %v123_v29, 0.0  ;;  %v355_v29 = vpop.permute.xlu0 %354 }
  0xce   :  { %v604_v31 = vpop.f32.mrf.mxu0 }
  0xcf   :  { %v126_v33 = vadd.f32 %v604_v31, %v57_v30  ;;  %v129_v39 = vmax.f32 %v115_v32, 0.0 }
  0xd0   :  { %v117_v35 = vpop.f32.mrf.mxu0 }
  0xd1   :  { %v132_v37 = vmax.f32 %v126_v33, 0.0  ;;  %v118_v38 = vadd.f32 %v117_v35, %v47_v34  ;;  %v350_v33 = vpop.permute.xlu1 %349 }
  0xd3   :  { %v130_v40 = vmax.f32 %v118_v38, 0.0  ;;  %v138_v41 = vpack.c.bf16 %v132_v37, %v131_v36  ;;  %v31_v38 = vld [vmem:[%s820_s4] sm:$0x1]  ;;  %s684_s4 = smov [#allocation3]  }
  0xd4   :  { %s533_s19 = sshll.u32 %s684_s4, 4  ;;  %s534_s19 = int_to_ptr.vmem [resolvable:$true] %s533_s19 }
  0xd5   :  { %v137_v42 = vpack.c.bf16 %v130_v40, %v129_v39  ;;  %605 = vmatprep.subr.bf16.mxu1 %v138_v41  ;;  %v441_v39 = vlaneseq  ;;  %s659_s20 = scalar_lea.vmem %s534_s19, 16  ;;  %s663_s21 = scalar_lea.vmem %s534_s19, 32 }
  0xd6   :  { %606 = vmatpush3.bf16.msra.mxu1 %v138_v41  ;;  %p660_p0 = scmp.ne.s32.totalorder %s534_s19, %s659_s20  ;;  %p664_p1 = scmp.lt.s32.totalorder %s534_s19, %s534_s19 }
  0xd7   :  { %607 = vmatprep.subr.bf16.mxu1 %v137_v42  ;;  %v442_v40 = vshrl.u32 %v441_v39, 7  ;;  %p665_p2 = scmp.lt.s32.totalorder %s663_s21, %s659_s20 }
  0xd9   :  { %v443_v41 = vsub.s32 0, %v442_v40  ;;  %p666_p3 = por %p665_p2, %p664_p1 }
  0xda   :  { %608 = vmatpush3.bf16.msra.mxu1 %v137_v42  ;;  %v439_v42 = vpop.permute.xlu0 %438 }
  0xdb   :  { %p667_p4 = pnand %p666_p3, %p660_p0 }
  0xdd   :  { %610 = vmatmul.mubr.msk.bf16.vlgmr.msra.gmra.mxu1 %vm174_vm2, %v650_v43  ;;  %v444_v43 = vrot.slane %v439_v42, %v443_v41 }
  0xde   :  { %625 = vmatprep.mubr.msk.bf16.mxu1 %vm174_vm2, %v653_v0 }
 0x19d   :  { %v611_v47 = vpop.f32.mrf.mxu1 }
 0x19e   :  { %v224_v49 = vadd.f32 %v611_v47, %v157_v45 }
 0x19f   :  { %v215_v48 = vpop.f32.mrf.mxu1 }
 0x1a0   :  { %v216_v52 = vadd.f32 %v215_v48, %v147_v50  ;;  %v232_v56 = vmax.f32 %v224_v49, 0.0  ;;  %v524_v50 = vmul.f32 -0.1, %v726_v1 }
 0x1a1   :  { %v612_v51 = vpop.f32.mrf.mxu1 }
 0x1a2   :  { %v227_v53 = vadd.f32 %v612_v51, %v162_v46  ;;  %v230_v59 = vmax.f32 %v216_v52, 0.0 }
 0x1a3   :  { %v218_v55 = vpop.f32.mrf.mxu1 }
 0x1a4   :  { %v233_v57 = vmax.f32 %v227_v53, 0.0  ;;  %v219_v58 = vadd.f32 %v218_v55, %v152_v54 }
 0x1a6   :  { %v240_v60 = vpack.c.bf16 %v233_v57, %v232_v56  ;;  %v231_v61 = vmax.f32 %v219_v58, 0.0 }
 0x1a8   :  { %v239_v62 = vpack.c.bf16 %v231_v61, %v230_v59  ;;  %613 = vmatprep.subr.bf16.mxu0 %v240_v60 }
 0x1a9   :  { %614 = vmatpush3.bf16.msra.mxu0 %v240_v60 }
 0x1aa   :  { %615 = vmatprep.subr.bf16.mxu0 %v239_v62 }
 0x1ad   :  { %616 = vmatpush3.bf16.msra.mxu0 %v239_v62 }
 0x1ae   :  { %629 = vmatprep.subr.mxu0 %v682_v21 }
 0x1b0   :  { %618 = vmatmul.mubr.msk.bf16.vlgmr.msra.gmra.mxu0 %vm174_vm2, %v652_v63 }
 0x1b1   :  { %637 = vmatprep.mubr.msk.f32.mxu0 %vm683_vm3, %v682_v21 }
 0x270   :  { %v619_v4 = vpop.f32.mrf.mxu0 }
 0x271   :  { %v325_v6 = vadd.f32 %v619_v4, %v259_v2 }
 0x272   :  { %v316_v5 = vpop.f32.mrf.mxu0 }
 0x273   :  { %v317_v9 = vadd.f32 %v316_v5, %v249_v7  ;;  %v333_v13 = vmax.f32 %v325_v6, 0.0 }
 0x274   :  { %v620_v8 = vpop.f32.mrf.mxu0 }
 0x275   :  { %v328_v10 = vadd.f32 %v620_v8, %v264_v3  ;;  %v331_v16 = vmax.f32 %v317_v9, 0.0 }
 0x276   :  { %v319_v12 = vpop.f32.mrf.mxu0 }
 0x277   :  { %v334_v14 = vmax.f32 %v328_v10, 0.0  ;;  %v320_v15 = vadd.f32 %v319_v12, %v254_v11 }
 0x279   :  { %v341_v17 = vpack.c.bf16 %v334_v14, %v333_v13  ;;  %v332_v18 = vmax.f32 %v320_v15, 0.0 }
 0x27b   :  { %v340_v19 = vpack.c.bf16 %v332_v18, %v331_v16  ;;  %621 = vmatprep.subr.bf16.mxu1 %v341_v17 }
 0x27c   :  { %622 = vmatpush3.bf16.msra.mxu1 %v341_v17 }
 0x27d   :  { %623 = vmatprep.subr.bf16.mxu1 %v340_v19 }
 0x280   :  { %624 = vmatpush3.bf16.msra.mxu1 %v340_v19 }
 0x283   :  { %626 = vmatmul.mubr.msk.bf16.vlgmr.msra.gmra.mxu1 %vm174_vm2, %v654_v20 }
 0x343   :  { %v627_v23 = vpop.f32.mrf.mxu1 }
 0x344   :  { %v426_v27 = vadd.f32 %v627_v23, %v360_v24 }
 0x345   :  { %v417_v25 = vpop.f32.mrf.mxu1 }
 0x346   :  { %v434_v34 = vmax.f32 %v426_v27, 0.0  ;;  %v418_v35 = vadd.f32 %v417_v25, %v350_v33 }
 0x347   :  { %v628_v26 = vpop.f32.mrf.mxu1 }
 0x348   :  { %v429_v28 = vadd.f32 %v628_v26, %v365_v22  ;;  %v432_v37 = vmax.f32 %v418_v35, 0.0 }
 0x349   :  { %v420_v30 = vpop.f32.mrf.mxu1 }
 0x34a   :  { %v435_v31 = vmax.f32 %v429_v28, 0.0  ;;  %v421_v32 = vadd.f32 %v420_v30, %v355_v29 }
 0x34c   :  { %630 = vmatpush3.msra.mxu0 %v435_v31  ;;  %v433_v36 = vmax.f32 %v421_v32, 0.0 }
 0x34d   :  { %631 = vmatprep.subr.mxu0 %v682_v21 }
 0x34e   :  { %632 = vmatpush3.msra.mxu0 %v434_v34 }
 0x34f   :  { %633 = vmatprep.subr.mxu0 %v682_v21 }
 0x350   :  { %634 = vmatpush3.msra.mxu0 %v433_v36 }
 0x351   :  { %635 = vmatprep.subr.mxu0 %v682_v21 }
 0x352   :  { %636 = vmatpush3.msra.mxu0 %v432_v37 }
 0x353   :  { %638 = vmatmul.mubr.msk.f32.vlgmr.msra.gmra.mxu0 %vm174_vm2, %v31_v38 }
 0x413   :  { %v514_v44 = vpop.f32.mrf.mxu0 }
 0x414   :  { %v515_v45 = vadd.f32 %v514_v44, %v444_v43 }
 0x415   :  { %v639_v46 = vpop.f32.mrf.mxu0 }
 0x416   :  { %v578_v47 = vmul.f32 -1.442695, %v515_v45 }
 0x418   :  { %655 = vpow2.f32 %v578_v47 }
 0x425   :  { %v656_v48 = vpop.eup %655 }
 0x426   :  { %v521_v49 = vadd.f32 1.0, %v656_v48 }
 0x428   :  { %657 = vrcp.f32 %v521_v49 }
 0x435   :  { %v658_v51 = vpop.eup %657 }
 0x436   :  { %v525_v52 = vsub.f32 %v524_v50, %v658_v51 }
 0x438   :  { %526 = vst [vmem:[#allocation3] sm:$0x1] %v525_v52 }
 0x439   :  { %670 = shalt.err (!%p667_p4)
}
 0x43a   :  { %536 = dma.vmem_to_hbm [thread:$0]  %s534_s19, 16, %s822_s6, [#allocation4]  }
 0x43b   :  { %679 = dma.done.wait [#allocation4], 16  }
 0x43c   :  { %680 = vsyncadd [#allocation4], 4294967280 }
 0x43d   :  { %540 = vsyncpa [#allocation4], 1 }

</bundles_post_ra>
